<compile_context>
chip_gen: v6e
topology: v6e:2x2x1
jax: 0.10.0
libtpu: 0.0.40
codegen_flags: <defaults>
</compile_context>

<pallas_src>
import functools
import math

import jax
import jax.numpy as jnp
from jax.experimental import pallas as pl
from jax.experimental.pallas import tpu as pltpu


def _round_up(v, m):
    return (v + m - 1) // m * m


def _pad2d(a, rows, cols):
    return jnp.pad(a, ((0, rows - a.shape[0]), (0, cols - a.shape[1])))


def _choose_row_tile(n):
    # Largest 8-aligned candidate that evenly tiles the node count; big tiles
    # amortize the ~0.35us per-grid-step overhead, small enough to fit the
    # (row_tile, N) adj block (x2 for double buffering) in scoped VMEM.
    for cand in (512, 256, 128, 64, 32, 16, 8):
        if n % cand == 0:
            return cand
    return n


def _gc_layer_kernel(x_ref, adj_ref, w_ref, b_ref, o_ref, *, apply_relu):
    # support = x @ W : bf16 operands, f32 accumulation on the MXU.
    # Recomputed per row tile -- it is tiny compared to adj_tile @ support.
    support = jnp.dot(x_ref[...], w_ref[...], preferred_element_type=jnp.float32)
    agg = jnp.dot(
        adj_ref[...], support.astype(jnp.bfloat16),
        preferred_element_type=jnp.float32,
    )
    out = agg + b_ref[...]  # bias add in f32
    if apply_relu:
        out = jnp.maximum(out, 0.0)
    o_ref[...] = out.astype(o_ref.dtype)


def _gc_layer(x_b, adj_b, w_b, b_f, *, apply_relu, row_tile, out_dtype):
    """One graph-conv layer: out = (relu?)(adj @ (x @ W) + b), row-tiled over adj."""
    n = adj_b.shape[0]
    d_in = x_b.shape[1]
    d_out = w_b.shape[1]
    n_tiles = pl.cdiv(n, row_tile)

    cost = pl.CostEstimate(
        flops=2 * n * n * d_out + 2 * n_tiles * n * d_in * d_out,
        transcendentals=0,
        bytes_accessed=int(
            adj_b.size * adj_b.dtype.itemsize
            + x_b.size * x_b.dtype.itemsize
            + w_b.size * w_b.dtype.itemsize
            + b_f.size * b_f.dtype.itemsize
            + n * d_out * jnp.dtype(out_dtype).itemsize
        ),
    )

    return pl.pallas_call(
        functools.partial(_gc_layer_kernel, apply_relu=apply_relu),
        out_shape=jax.ShapeDtypeStruct((n, d_out), out_dtype),
        grid=(n_tiles,),
        in_specs=[
            pl.BlockSpec((n, d_in), lambda i: (0, 0)),        # x / h : whole (every tile needs all rows)
            pl.BlockSpec((row_tile, n), lambda i: (i, 0)),    # adj   : row tile
            pl.BlockSpec((d_in, d_out), lambda i: (0, 0)),    # W     : whole
            pl.BlockSpec((1, d_out), lambda i: (0, 0)),       # bias  : whole
        ],
        out_specs=pl.BlockSpec((row_tile, d_out), lambda i: (i, 0)),
        compiler_params=pltpu.CompilerParams(
            dimension_semantics=("parallel",),       # rows shard across TCs (v7x megacore)
            vmem_limit_bytes=32 * 1024 * 1024,       # explicit budget, portable v5e/v6e/v7x
        ),
        cost_estimate=cost,
    )(x_b, adj_b, w_b, b_f)


def gcn_forward(x, adj, w1, b1, w2, b2, *, row_tile=None):
    n, f = x.shape
    h_dim = w1.shape[1]
    c_dim = w2.shape[1]
    f_p = _round_up(f, 128)
    h_p = _round_up(h_dim, 128)
    c_p = _round_up(c_dim, 128)

    if row_tile is None:
        row_tile = _choose_row_tile(n)

    # bf16 operands for the MXU; zero-padded feature/hidden/class lanes to 128
    # (zero columns/rows are exact no-ops numerically).
    x_b = _pad2d(x, n, f_p).astype(jnp.bfloat16)
    adj_b = adj.astype(jnp.bfloat16)
    w1_b = _pad2d(w1, f_p, h_p).astype(jnp.bfloat16)
    w2_b = _pad2d(w2, h_p, c_p).astype(jnp.bfloat16)
    b1_p = _pad2d(b1.reshape(1, -1), 1, h_p).astype(jnp.float32)
    b2_p = _pad2d(b2.reshape(1, -1), 1, c_p).astype(jnp.float32)

    # Layer 1 (+ relu). Hidden activations stored bf16 for layer 2's MXU pass.
    h = _gc_layer(x_b, adj_b, w1_b, b1_p,
                  apply_relu=True, row_tile=row_tile, out_dtype=jnp.bfloat16)
    # Dropout: identity in eval mode.
    # Layer 2 (final logits in f32).
    out = _gc_layer(h, adj_b, w2_b, b2_p,
                    apply_relu=False, row_tile=row_tile, out_dtype=jnp.float32)
    return out[:, :c_dim]


def init_gcn_params(key, nfeats, nhids, nclasses):
    """Deterministic init mirroring GraphConvolutionLayer.reset_parameters."""
    k1, k2, k3, k4 = jax.random.split(key, 4)
    stdv1 = 1.0 / math.sqrt(nhids)
    stdv2 = 1.0 / math.sqrt(nclasses)
    w1 = jax.random.uniform(k1, (nfeats, nhids), jnp.float32, -stdv1, stdv1)
    b1 = jax.random.uniform(k2, (nhids,), jnp.float32, -stdv1, stdv1)
    w2 = jax.random.uniform(k3, (nhids, nclasses), jnp.float32, -stdv2, stdv2)
    b2 = jax.random.uniform(k4, (nclasses,), jnp.float32, -stdv2, stdv2)
    return w1, b1, w2, b2


if __name__ == "__main__":
    N = 64        # number of graph nodes
    NFEATS = 32   # input features
    NHIDS = 32    # hidden features
    NCLASSES = 8  # output classes

    key = jax.random.PRNGKey(0)
    kx, kadj, kparams = jax.random.split(key, 3)

    x = jax.random.normal(kx, (N, NFEATS), jnp.float32)
    # Symmetric row-normalized dense adjacency (synthetic).
    a = (jax.random.uniform(kadj, (N, N)) < 0.1).astype(jnp.float32)
    adj = a + a.T + jnp.eye(N, dtype=jnp.float32)
    adj = adj / jnp.sum(adj, axis=1, keepdims=True)

    w1, b1, w2, b2 = init_gcn_params(kparams, NFEATS, NHIDS, NCLASSES)

    # row_tile=32 -> grid of 2 row tiles, exercising the parallel row tiling.
    out = gcn_forward(x, adj, w1, b1, w2, b2, row_tile=32)
    jax.block_until_ready(out)

    # f32 reference; tolerance loosened for bf16 MXU operands.
    h_ref = jnp.maximum(adj @ (x @ w1) + b1, 0.0)
    out_ref = adj @ (h_ref @ w2) + b2
    assert out.shape == (N, NCLASSES)
    assert jnp.allclose(out, out_ref, atol=5e-2, rtol=5e-2), (
        float(jnp.max(jnp.abs(out - out_ref))))

    print("KERNEL_OK")
</pallas_src>

<mosaic_0001>
module attributes {stable_mosaic.version = 11 : i64} {
  func.func @_gc_layer_kernel(%arg0: i32, %arg1: memref<64x128xbf16, #tpu.memory_space<vmem>>, %arg2: memref<32x64xbf16, #tpu.memory_space<vmem>>, %arg3: memref<128x128xbf16, #tpu.memory_space<vmem>>, %arg4: memref<1x128xf32, #tpu.memory_space<vmem>>, %arg5: memref<32x128xbf16, #tpu.memory_space<vmem>>) attributes {dimension_semantics = [#tpu.dimension_semantics<parallel>], iteration_bounds = array<i64: 2>, scalar_prefetch = 0 : i64, scratch_operands = 0 : i64, tpu.core_type = #tpu.core_type<tc>, window_params = [{pipeline_mode = #tpu.pipeline_mode<synchronous>, transform_indices = @transform_0, window_bounds = array<i64: 64, 128>}, {transform_indices = @transform_1, window_bounds = array<i64: 32, 64>}, {pipeline_mode = #tpu.pipeline_mode<synchronous>, transform_indices = @transform_2, window_bounds = array<i64: 128, 128>}, {pipeline_mode = #tpu.pipeline_mode<synchronous>, transform_indices = @transform_3, window_bounds = array<i64: 1, 128>}, {transform_indices = @transform_4, window_bounds = array<i64: 32, 128>}]} {
    %c0 = arith.constant 0 : index
    %c0_0 = arith.constant 0 : index
    %0 = vector.load %arg1[%c0, %c0_0] : memref<64x128xbf16, #tpu.memory_space<vmem>>, vector<64x128xbf16>
    %c0_1 = arith.constant 0 : index
    %c0_2 = arith.constant 0 : index
    %1 = vector.load %arg3[%c0_1, %c0_2] : memref<128x128xbf16, #tpu.memory_space<vmem>>, vector<128x128xbf16>
    %cst = arith.constant dense<0.000000e+00> : vector<64x128xf32>
    %2 = tpu.matmul %0, %1, %cst {dimension_numbers = #tpu.dot_dimension_numbers<[1], [0], [0], [1], [0, 0, 1, 1], [], []>} : vector<64x128xbf16>, vector<128x128xbf16>, vector<64x128xf32> -> vector<64x128xf32>
    %c0_3 = arith.constant 0 : index
    %c0_4 = arith.constant 0 : index
    %3 = vector.load %arg2[%c0_3, %c0_4] : memref<32x64xbf16, #tpu.memory_space<vmem>>, vector<32x64xbf16>
    %4 = arith.truncf %2 : vector<64x128xf32> to vector<64x128xbf16>
    %cst_5 = arith.constant dense<0.000000e+00> : vector<32x128xf32>
    %5 = tpu.matmul %3, %4, %cst_5 {dimension_numbers = #tpu.dot_dimension_numbers<[1], [0], [0], [1], [0, 0, 1, 1], [], []>} : vector<32x64xbf16>, vector<64x128xbf16>, vector<32x128xf32> -> vector<32x128xf32>
    %c0_6 = arith.constant 0 : index
    %c0_7 = arith.constant 0 : index
    %6 = vector.load %arg4[%c0_6, %c0_7] : memref<1x128xf32, #tpu.memory_space<vmem>>, vector<1x128xf32>
    %7 = vector.broadcast %6 : vector<1x128xf32> to vector<32x128xf32>
    %8 = arith.addf %5, %7 : vector<32x128xf32>
    %cst_8 = arith.constant 0.000000e+00 : f32
    %9 = vector.broadcast %cst_8 : f32 to vector<32x128xf32>
    %10 = arith.maximumf %8, %9 : vector<32x128xf32>
    %11 = arith.truncf %10 : vector<32x128xf32> to vector<32x128xbf16>
    %c0_9 = arith.constant 0 : index
    %c0_10 = arith.constant 0 : index
    %12 = vector.load %arg5[%c0_9, %c0_10] : memref<32x128xbf16, #tpu.memory_space<vmem>>, vector<32x128xbf16>
    tpu.vector_store %arg5[%c0_9, %c0_10], %11 {strides = array<i32>} : memref<32x128xbf16, #tpu.memory_space<vmem>>, vector<32x128xbf16>,
    return
  }
  func.func @transform_0(%arg0: i32) -> (i32, i32) {
    %c0_i32 = arith.constant 0 : i32
    %c0_i32_0 = arith.constant 0 : i32
    %c0_i32_1 = arith.constant 0 : i32
    return %c0_i32, %c0_i32_0 : i32, i32
  }
  func.func @transform_1(%arg0: i32) -> (i32, i32) {
    %c0_i32 = arith.constant 0 : i32
    %c0_i32_0 = arith.constant 0 : i32
    return %arg0, %c0_i32 : i32, i32
  }
  func.func @transform_2(%arg0: i32) -> (i32, i32) {
    %c0_i32 = arith.constant 0 : i32
    %c0_i32_0 = arith.constant 0 : i32
    %c0_i32_1 = arith.constant 0 : i32
    return %c0_i32, %c0_i32_0 : i32, i32
  }
  func.func @transform_3(%arg0: i32) -> (i32, i32) {
    %c0_i32 = arith.constant 0 : i32
    %c0_i32_0 = arith.constant 0 : i32
    %c0_i32_1 = arith.constant 0 : i32
    return %c0_i32, %c0_i32_0 : i32, i32
  }
  func.func @transform_4(%arg0: i32) -> (i32, i32) {
    %c0_i32 = arith.constant 0 : i32
    %c0_i32_0 = arith.constant 0 : i32
    return %arg0, %c0_i32 : i32, i32
  }
}

</mosaic_0001>

<bundles_post_ra>
// kernel: tpu_custom_call.1
= control target key start
LH: loop header
LB: loop body
LE: loop exit
PB: predicated region body
PF: predicated region fallthrough
CT: control target
= control target key end

     0   :  { %9 = vsyncpa [#allocation3], 0  ;;  %s1226_s0 = inlined_call_operand.hbm [shape: bf16[64,128], index: 0, kind: input, shape index: {}]   ;;  %s1227_s1 = inlined_call_operand.hbm [shape: bf16[64,64], index: 1, kind: input, shape index: {}]   ;;  %s1228_s2 = inlined_call_operand.hbm [shape: bf16[128,128], index: 2, kind: input, shape index: {}]   ;;  %s1229_s3 = inlined_call_operand.vmem [shape: f32[1,128], index: 3, kind: input, shape index: {}]   ;;  %s1230_s4 = inlined_call_operand.hbm [shape: bf16[64,128], index: 4, kind: output, shape index: {}]  }
   0x1   :  { %10 = vsyncpa [#allocation6], 0 }
   0x2   :  { %12 = vsyncpa [#allocation6 + $0x1], 0 }
   0x3   :  { %13 = vsyncpa [#allocation4], 0 }
   0x4   :  { %15 = vsyncpa [#allocation4 + $0x1], 0  ;;  %s1004_s15 = smov 0   ;;  %s1006_s16 = smov 0  }
   0x5   :  { %s1008_s17 = smov 0   ;;  %s1010_s18 = smov 0  }
   0x6 LB: > { %s1025_s19 = sadd.s32 4294967295, %s969_s18   ;;  %s622_s20 = sadd.s32 4294967294, %s969_s18   ;;  %s969_s18 = sphi %s1010_s18, %s1254_s18   ;;  %s965_s17 = sphi %s1008_s17, %s1253_s17   ;;  %s961_s16 = sphi %s1006_s16, %s1252_s16   ;;  %s957_s15 = sphi %s1004_s15, %s1251_s15  }
   0x7   : > { %s1029_s21 = sadd.s32 1, %s969_s18   ;;  %s49_s22 = sadd.s32 1, %s965_s17 }
   0x8   : > { %s46_s23 = ssub.s32 %s969_s18, %s1029_s21  ;;  %p56_p0 = scmp.ne.s32.totalorder %s965_s17, %s961_s16 }
   0x9   : > { %p47_p1 = scmp.eq.s32.totalorder %s46_s23, 0  ;;  %p57_p2 = scmp.eq.s32.totalorder %s969_s18, 0 }
   0xa   : > { %p62_p3 = scmp.ne.s32.totalorder %s961_s16, %s957_s15  ;;  %p1232_p4 = scmp.eq.s32.totalorder %s1025_s19, 0 }
   0xb   : > { %s1041_s24 = scalar_select %p47_p1, %s965_s17, %s49_s22  }
   0xc   : > { %p1043_p5 = por %p57_p2, %p56_p0  ;;  %p1049_p6 = por %p1232_p4, %p62_p3 }
   0xd   : > { %p128_p7 = scmp.eq.s32.totalorder %s1025_s19, 1  ;;  %p134_p8 = scmp.eq.s32.totalorder %s622_s20, 1 }
   0xe   : > { %s1236_s26 = scalar_select %p1049_p6, 1, 0 }
   0xf   : > { %p623_p9 = scmp.ge.s32.totalorder %s969_s18, 1  ;;  %p141_p10 = scmp.lt.s32.totalorder %s969_s18, 3 }
  0x10   : > { %p1056_p11 = por %p128_p7, %p56_p0  ;;  %p1060_p12 = por %p134_p8, %p62_p3 }
  0x11   : > { %p1064_p13 = pnand %p623_p9, %p141_p10  ;;  %s971_s30 = smov [#allocation7]  }
  0x12   : > { %s1237_s27 = scalar_select %p1056_p11, 1, 0 }
  0x13   : > { %s1238_s28 = scalar_select %p1060_p12, 1, 0 }
  0x14   : > { %s1239_s29 = scalar_select %p1064_p13, 1, 0 }
  0x15   : > { %p744_p1 = pneg %p1064_p13  ;;  %s166_s5 = sshll.u32 %s971_s30, 4  ;;  %s167_s5 = int_to_ptr.vmem [resolvable:$true] %s166_s5 }
  0x16   : > { %p761_p0 = scmp.lt.s32.totalorder %s969_s18, 2  ;;  %s972_s7 = smov [#allocation2]  }
  0x17   : > { %p1073_p6 = pnand %p744_p1, %p1232_p4  ;;  %s153_s8 = sshll.u32 %s972_s7, 4  ;;  %s154_s8 = int_to_ptr.vmem [resolvable:$true] %s153_s8 }
  0x18   : > { %s828_s9 = scalar_lea.vmem %s167_s5, 1024  ;;  %p836_p10 = scmp.lt.s32.totalorder %s167_s5, %s167_s5 }
  0x19   : > { %p819_p3 = pneg %p1073_p6  ;;  %p829_p7 = scmp.ne.s32.totalorder %s167_s5, %s828_s9 }
  0x1a   : > { %p837_p2 = scmp.lt.s32.totalorder %s828_s9, %s828_s9 }
  0x1b   : > { %p831_p8 = pnand %p829_p7, %p819_p3 }
  0x1c   : > { %p838_p1 = por %p837_p2, %p836_p10 }
  0x1d   : > { %p832_p9 = pneg %p831_p8 }
  0x1f   : > { %p839_p4 = pnand %p838_p1, %p832_p9 }
  0x21   : > { %842 = shalt.err (!%p839_p4)
}
  0x22   : > { %s973_s10 = smov 64   ;;  %s974_s11 = smov 4  }
  0x23   : > { %750 = dma.hbm_to_vmem [thread:$0]  (!%p1073_p6), %s1228_s2, 1024, %s167_s5, [#allocation6], %s973_s10, %s973_s10, %s974_s11  }
  0x24   : > { %p1095_p7 = pnand %p761_p0, %p1043_p5  ;;  %s854_s20 = scalar_lea.vmem %s154_s8, 512 }
  0x25   : > { %p855_p4 = scmp.ne.s32.totalorder %s154_s8, %s854_s20  ;;  %p862_p9 = scmp.lt.s32.totalorder %s154_s8, %s154_s8 }
  0x26   : > { %p863_p10 = scmp.lt.s32.totalorder %s854_s20, %s854_s20 }
  0x27   : > { %p857_p2 = pnand %p855_p4, %p819_p3 }
  0x28   : > { %p864_p1 = por %p863_p10, %p862_p9 }
  0x29   : > { %p858_p8 = pneg %p857_p2 }
  0x2b   : > { %p865_p12 = pnand %p864_p1, %p858_p8 }
  0x2d   : > { %868 = shalt.err (!%p865_p12)
}
  0x2e   : > { %747 = dma.hbm_to_vmem [thread:$0]  (!%p1073_p6), %s1226_s0, 512, %s154_s8, [#allocation3], %s973_s10, %s973_s10, %s974_s11  }
  0x2f   : > { %s183_s25 = sand.u32 1, %s969_s18   ;;  %s185_s30 = sand.u32 1, %s965_s17  }
  0x30   : > { %s627_s5 = sshll.u32 %s185_s30, 4  ;;  %s661_s7 = sshll.u32 %s969_s18, 8 }
  0x31   : > { %s1116_s13 = scalar_lea.hbm %s1227_s1, %s661_s7  ;;  %s187_s6 = scalar_lea.vmem [#allocation5], %s627_s5 }
  0x32   : > { %s194_s20 = sshll.u32 %s187_s6, 4  ;;  %s1120_s22 = scalar_lea.sflag [#allocation6], %s183_s25  ;;  %s1118_s20 = int_to_ptr.vmem [resolvable:$true] %s194_s20 }
  0x33   : > { %s869_s23 = scalar_lea.hbm %s1116_s13, 256  ;;  %p871_p6 = pneg %p1095_p7 }
  0x34   : > { %p870_p5 = scmp.ne.s32.totalorder %s1116_s13, %s869_s23  ;;  %s874_s7 = scalar_lea.hbm %s1227_s1, 512 }
  0x35   : > { %p875_p3 = scmp.lt.s32.totalorder %s1116_s13, %s1227_s1  ;;  %p876_p4 = scmp.lt.s32.totalorder %s874_s7, %s869_s23 }
  0x36   : > { %p872_p12 = pnand %p871_p6, %p870_p5 }
  0x37   : > { %p877_p2 = por %p876_p4, %p875_p3 }
  0x38   : > { %p873_p0 = pneg %p872_p12 }
  0x3a   : > { %p878_p8 = pnand %p877_p2, %p873_p0 }
  0x3c   : > { %881 = shalt.err (!%p878_p8)
}
  0x3d   : > { %s882_s25 = scalar_lea.vmem %s1118_s20, 256  ;;  %s975_s5 = smov [#allocation5]  }
  0x3e   : > { %p883_p9 = scmp.ne.s32.totalorder %s1118_s20, %s882_s25  ;;  %s887_s6 = sshll.u32 %s975_s5, 4  ;;  %s888_s6 = int_to_ptr.vmem [resolvable:$false] %s887_s6 }
  0x3f   : > { %s889_s8 = scalar_lea.vmem %s888_s6, 512  ;;  %p890_p5 = scmp.lt.s32.totalorder %s1118_s20, %s888_s6 }
  0x40   : > { %p885_p10 = pnand %p883_p9, %p871_p6  ;;  %p891_p12 = scmp.lt.s32.totalorder %s889_s8, %s882_s25 }
  0x42   : > { %p886_p1 = pneg %p885_p10  ;;  %p892_p11 = por %p891_p12, %p890_p5 }
  0x44   : > { %p893_p13 = pnand %p892_p11, %p886_p1 }
  0x46   : > { %896 = shalt.err (!%p893_p13)
}
  0x47   : > { %754 = dma.hbm_to_vmem [thread:$0]  (!%p1095_p7), %s1116_s13, 256, %s1118_s20, %s1120_s22, %s973_s10, %s973_s10, %s974_s11  }
  0x48   : > { %p1242_p6 = scmp.ne.s32.totalorder %s1239_s29, 0 }
  0x49   : > { %p1243_p0 = scmp.eq.s32.totalorder (!%p1242_p6), %s1025_s19, 0 }
  0x4a   : > { %206 = sbr.rel (%p1242_p6) target bundleno = 563 (0x233), region = 36 }
  0x4f   : > { %940 = dma.done.wait (%p1243_p0), [#allocation3], 512   ;;  %p1244_p3 = pmov %p1243_p0 }
  0x50   : > { %s212_s14 = sand.u32 1, %s1025_s19   ;;  %s214_s23 = sand.u32 1, %s961_s16  }
  0x51   : > { %942 = vsyncadd (%p1244_p3), [#allocation3], 4294966784  ;;  %s1154_s30 = sshll.u32 %s214_s23, 4  ;;  %s213_s10 = scalar_lea.sflag [#allocation6], %s212_s14 }
  0x52   : > { %s216_s11 = scalar_lea.vmem [#allocation5], %s1154_s30  ;;  %p1245_p11 = scmp.ne.s32.totalorder %s1236_s26, 0 }
  0x54   : > { %944 = dma.done.wait (%p1245_p11), %s213_s10, 256  }
  0x55   : > { %946 = vsyncadd (%p1245_p11), %s213_s10, 4294967040  ;;  %p1246_p13 = pmov %p1243_p0 }
  0x56   : > { %p1247_p7 = pmov %p1243_p0 }
  0x57   : > { %948 = dma.done.wait (%p1246_p13), [#allocation6], 1024  }
  0x58   : > { %950 = vsyncadd (%p1247_p7), [#allocation6], 4294966272  ;;  %v803_v0 = vld [vmem:[#allocation7 + $0x38] sm:$0xff]   ;;  %v804_v1 = vld [vmem:[#allocation7 + $0x30] sm:$0xff]   ;;  %vm434_vm0 = vcmask 523264   ;;  %s244_s13 = scalar_lea.vmem [#allocation8], %s1154_s30 }
  0x59   : > { %696 = vmatprep.subr.bf16.mxu0 %v803_v0  ;;  %v805_v2 = vld [vmem:[#allocation7 + $0x28] sm:$0xff]   ;;  %v806_v3 = vld [vmem:[#allocation7 + $0x20] sm:$0xff]   ;;  %v807_v5 = vld [vmem:[#allocation7 + $0x18] sm:$0xff]   ;;  %s528_s20 = sshll.u32 %s244_s13, 4  ;;  %s666_s22 = sshll.u32 %s1025_s19, 8  ;;  %s1176_s20 = int_to_ptr.vmem [resolvable:$true] %s528_s20 }
  0x5a   : > { %697 = vmatpush3.bf16.msra.mxu0 %v803_v0  ;;  %v811_v4 = vld [vmem:[#allocation2] sm:$0xff]   ;;  %v808_v6 = vld [vmem:[#allocation7 + $0x10] sm:$0xff]   ;;  %v809_v7 = vld [vmem:[#allocation7 + $0x8] sm:$0xff]   ;;  %s1181_s12 = scalar_lea.hbm %s1230_s4, %s666_s22  ;;  %s1185_s25 = scalar_lea.sflag [#allocation4], %s214_s23 }
  0x5b   : > { %698 = vmatprep.subr.bf16.mxu0 %v804_v1  ;;  %712 = vmatprep.mubr.bf16.mxu0 %v811_v4  ;;  %v810_v8 = vld [vmem:[#allocation7] sm:$0xff]   ;;  %v812_v9 = vld [vmem:[#allocation2 + $0x8] sm:$0xff]   ;;  %v813_v10 = vld [vmem:[#allocation2 + $0x10] sm:$0xff]   ;;  %s897_s19 = scalar_lea.vmem %s1176_s20, 256  ;;  %p1248_p2 = scmp.ne.s32.totalorder %s1237_s27, 0 }
  0x5c   : > { %v814_v11 = vld [vmem:[#allocation2 + $0x18] sm:$0xff]   ;;  %v815_v12 = vld [vmem:[%s216_s11] sm:$0xff]   ;;  %p898_p4 = scmp.ne.s32.totalorder %s1176_s20, %s897_s19  ;;  %s976_s5 = smov [#allocation8]  }
  0x5d   : > { %728 = vmatprep.mubr.msk.bf16.mxu1 %vm434_vm0, %v815_v12  ;;  %v816_v25 = vld [vmem:[%s216_s11 + $0x8] sm:$0xff]   ;;  %v647_v27 = vld [vmem:[%s1229_s3] ss:$0 sm:$0xff]  ;;  %s901_s6 = sshll.u32 %s976_s5, 4  ;;  %s902_s6 = int_to_ptr.vmem [resolvable:$false] %s901_s6 }
  0x5e   : > { %699 = vmatpush3.bf16.msra.mxu0 %v804_v1  ;;  %p899_p8 = pnand %p898_p4, %p1248_p2  ;;  %s903_s8 = scalar_lea.vmem %s902_s6, 512 }
  0x5f   : > { %700 = vmatprep.subr.bf16.mxu0 %v805_v2  ;;  %p904_p10 = scmp.lt.s32.totalorder %s1176_s20, %s902_s6  ;;  %p905_p1 = scmp.lt.s32.totalorder %s903_s8, %s897_s19 }
  0x60   : > { %p900_p9 = pneg %p899_p8 }
  0x61   : > { %p906_p5 = por %p905_p1, %p904_p10 }
  0x62   : > { %701 = vmatpush3.bf16.msra.mxu0 %v805_v2 }
  0x63   : > { %702 = vmatprep.subr.bf16.mxu0 %v806_v3  ;;  %p907_p12 = pnand %p906_p5, %p900_p9 }
  0x66   : > { %703 = vmatpush3.bf16.msra.mxu0 %v806_v3 }
  0x67   : > { %704 = vmatprep.subr.bf16.mxu0 %v807_v5 }
  0x6a   : > { %705 = vmatpush3.bf16.msra.mxu0 %v807_v5 }
  0x6b   : > { %706 = vmatprep.subr.bf16.mxu0 %v808_v6 }
  0x6e   : > { %707 = vmatpush3.bf16.msra.mxu0 %v808_v6 }
  0x6f   : > { %708 = vmatprep.subr.bf16.mxu0 %v809_v7 }
  0x72   : > { %709 = vmatpush3.bf16.msra.mxu0 %v809_v7 }
  0x73   : > { %710 = vmatprep.subr.bf16.mxu0 %v810_v8 }
  0x76   : > { %711 = vmatpush3.bf16.msra.mxu0 %v810_v8 }
  0x79   : > { %713 = vmatmul.mubr.bf16.vlgmr.msra.gmra.mxu0 %v812_v9 }
  0x7a   : > { %716 = vmatprep.mubr.bf16.mxu0 %v813_v10 }
  0x81   : > { %717 = vmatmul.mubr.bf16.gmra.mxu0 %v814_v11 }
 0x139   : > { %v714_v13 = vpop.f32.mrf.mxu0 }
 0x13b   : > { %v378_v14 = vpop.f32.mrf.mxu0 }
 0x13d   : > { %v715_v15 = vpop.f32.mrf.mxu0 }
 0x13e   : > { %v414_v23 = vpack.c.bf16 %v715_v15, %v714_v13 }
 0x13f   : > { %v381_v16 = vpop.f32.mrf.mxu0 }
 0x140   : > { %v413_v24 = vpack.c.bf16 %v381_v16, %v378_v14 }
 0x141   : > { %v718_v17 = vpop.f32.mrf.mxu0 }
 0x143   : > { %v394_v18 = vpop.f32.mrf.mxu0 }
 0x145   : > { %v719_v19 = vpop.f32.mrf.mxu0 }
 0x146   : > { %v416_v20 = vpack.c.bf16 %v719_v19, %v718_v17 }
 0x147   : > { %v397_v21 = vpop.f32.mrf.mxu0 }
 0x148   : > { %v415_v22 = vpack.c.bf16 %v397_v21, %v394_v18  ;;  %720 = vmatprep.subr.bf16.mxu1 %v416_v20 }
 0x149   : > { %721 = vmatpush3.bf16.msra.mxu1 %v416_v20 }
 0x14a   : > { %722 = vmatprep.subr.bf16.mxu1 %v415_v22 }
 0x14d   : > { %723 = vmatpush3.bf16.msra.mxu1 %v415_v22 }
 0x14e   : > { %724 = vmatprep.subr.bf16.mxu1 %v414_v23 }
 0x151   : > { %725 = vmatpush3.bf16.msra.mxu1 %v414_v23 }
 0x152   : > { %726 = vmatprep.subr.bf16.mxu1 %v413_v24 }
 0x155   : > { %727 = vmatpush3.bf16.msra.mxu1 %v413_v24 }
 0x158   : > { %729 = vmatmul.mubr.msk.bf16.vlgmr.msra.gmra.mxu1 %vm434_vm0, %v816_v25 }
 0x218   : > { %v730_v26 = vpop.f32.mrf.mxu1 }
 0x219   : > { %v484_v29 = vadd.f32 %v730_v26, %v647_v27 }
 0x21a   : > { %v475_v28 = vpop.f32.mrf.mxu1 }
 0x21b   : > { %v476_v31 = vadd.f32 %v647_v27, %v475_v28  ;;  %v492_v34 = vmax.f32 %v484_v29, 0.0 }
 0x21c   : > { %v731_v30 = vpop.f32.mrf.mxu1 }
 0x21d   : > { %v487_v32 = vadd.f32 %v731_v30, %v647_v27  ;;  %v490_v37 = vmax.f32 %v476_v31, 0.0 }
 0x21e   : > { %v478_v33 = vpop.f32.mrf.mxu1 }
 0x21f   : > { %v493_v35 = vmax.f32 %v487_v32, 0.0  ;;  %v479_v36 = vadd.f32 %v647_v27, %v478_v33 }
 0x221   : > { %v675_v38 = vpack.c.bf16 %v493_v35, %v492_v34  ;;  %v491_v39 = vmax.f32 %v479_v36, 0.0 }
 0x223   : > { %677 = vst [vmem:[%s244_s13 + $0x8] sm:$0xff] %v675_v38   ;;  %v670_v40 = vpack.c.bf16 %v491_v39, %v490_v37 }
 0x225   : > { %671 = vst [vmem:[%s244_s13] sm:$0xff] %v670_v40  }
 0x226   : > { %910 = shalt.err (!%p907_p12)
}
 0x227   : > { %s911_s14 = scalar_lea.hbm %s1181_s12, 256  ;;  %s915_s10 = scalar_lea.hbm %s1230_s4, 512 }
 0x228   : > { %p912_p6 = scmp.ne.s32.totalorder %s1181_s12, %s911_s14  ;;  %p916_p11 = scmp.lt.s32.totalorder %s1181_s12, %s1230_s4 }
 0x229   : > { %p917_p13 = scmp.lt.s32.totalorder %s915_s10, %s911_s14 }
 0x22a   : > { %p913_p0 = pnand %p912_p6, %p1248_p2 }
 0x22b   : > { %p918_p7 = por %p917_p13, %p916_p11 }
 0x22c   : > { %p914_p3 = pneg %p913_p0 }
 0x22e   : > { %p919_p4 = pnand %p918_p7, %p914_p3 }
 0x230   : > { %922 = shalt.err (!%p919_p4)
}
 0x231   : > { %s977_s29 = smov 64   ;;  %s978_s13 = smov 4  }
 0x232   : > { %742 = dma.vmem_to_hbm [thread:$0]  (%p1248_p2), %s1176_s20, 256, %s1181_s12, %s1185_s25, %s977_s29, %s977_s29, %s978_s13  }
 0x233 PF: > { %s543_s22 = sand.u32 1, %s957_s15   ;;  %p1249_p8 = scmp.ne.s32.totalorder %s1238_s28, 0 }
 0x234   : > { %p1250_p9 = scmp.ge.s32.totalorder %s969_s18, 2  ;;  %s544_s7 = scalar_lea.sflag [#allocation4], %s543_s22 }
 0x236   : > { %p756_p10 = pnand %p1250_p9, %p1249_p8 }
 0x238   : > { %p757_p1 = pneg %p756_p10 }
 0x23a   : > { %952 = dma.done.wait (%p757_p1), %s544_s7, 256  }
 0x23b   : > { %954 = vsyncadd (%p757_p1), %s544_s7, 4294967040  ;;  %p18_p5 = scmp.ge.s32.totalorder %s1029_s21, 4   ;;  %s1251_s15 = smov %s961_s16 }
 0x23c   : > { %s1252_s16 = smov %s965_s17  ;;  %s1253_s17 = smov %s1041_s24 }
 0x23d   : > { %s1254_s18 = smov %s1029_s21  ;;  %20 = sbr.rel (!%p18_p5) target bundleno = 6 (0x6), region = 90 }
 0x242   :  { %549 = vsyncpa [#allocation3], 1 }
 0x243   :  { %551 = vsyncpa [#allocation3 + $0x1], 1 }
 0x244   :  { %552 = vsyncpa [#allocation6], 1 }
 0x245   :  { %554 = vsyncpa [#allocation6 + $0x1], 1 }
 0x246   :  { %555 = vsyncpa [#allocation4], 1 }
 0x247   :  { %557 = vsyncpa [#allocation4 + $0x1], 1 }

</bundles_post_ra>
